<compile_context>
chip_gen: v5e
topology: v5e:2x2
jax: 0.10.0
libtpu: 0.0.40
codegen_flags: <defaults>
</compile_context>

<pallas_src>
import jax
import jax.numpy as jnp
from jax.experimental import pallas as pl
from jax.experimental.pallas import tpu as pltpu


LANES = 128            # vreg lane width: one row of the layout = 128 batch elements
SUBLANES = 8           # f32 sublane tile height
MAX_TILE_ROWS = 4096   # 4096 rows x 128 lanes = 512K batch elems / grid step
                       # -> in(4 MiB)+out(2 MiB), double-buffered ~= 12 MiB VMEM


def _cdiv(a, b):
    return -(-a // b)


def _round_up(n, m):
    return ((n + m - 1) // m) * m


def mlp_kernel(p_ref, x_ref, o_ref):
    # p_ref : SMEM (33,) f32 = [W1[0,:] (8), W1[1,:] (8), b1 (8), W3[:,0] (8), b3 (1)]
    # x_ref : VMEM (2, TR, 128) f32 -- two feature planes, batch dense on (sublane, lane)
    # o_ref : VMEM (TR, 128) f32    -- fully dense output tile
    x0 = x_ref[0]                                   # (TR, 128) feature-0 plane
    x1 = x_ref[1]                                   # (TR, 128) feature-1 plane

    # fc1 + ReLU + fc3 accumulation: 8 statically-unrolled scalar-splat FMA chains
    # on the VPU (K=2 / K=8 is far too small to be worth MXU push/pop latency).
    acc = None
    for j in range(8):
        h = jnp.maximum(x0 * p_ref[j] + x1 * p_ref[8 + j] + p_ref[16 + j], 0.0)
        term = h * p_ref[24 + j]
        acc = term if acc is None else acc + term

    y = jnp.maximum(acc + p_ref[32], 0.0)           # fc3 bias + final ReLU
    o_ref[...] = y.astype(o_ref.dtype)


@jax.jit
def my_template_net(x, w1, b1, w3, b3):
    """x: (B, 2); w1: (2, 8); b1: (1, 8); w3: (8, 1); b3: (1, 1). Returns (B, 1) f32."""
    B = x.shape[0]

    # ---- tiling: batch laid out as (rows, 128); rows padded to a sublane multiple ----
    rows = _round_up(_cdiv(B, LANES), SUBLANES)
    n_tiles = max(2, _cdiv(rows, MAX_TILE_ROWS))          # >=2 tiles so both v7x TCs get work
    tile_rows = min(MAX_TILE_ROWS, _round_up(_cdiv(rows, n_tiles), SUBLANES))
    n_tiles = _cdiv(rows, tile_rows)
    rows_pad = n_tiles * tile_rows
    b_pad = rows_pad * LANES

    # ---- one relayout pass: (B, 2) -> feature-planar, batch-dense (2, rows_pad, 128) ----
    xf = x.astype(jnp.float32)
    if b_pad != B:
        xf = jnp.pad(xf, ((0, b_pad - B), (0, 0)))        # tail pad only; fuses into transpose
    xp = xf.T.reshape(2, rows_pad, LANES)

    # ---- all 33 weight/bias scalars packed into one SMEM array ----
    params = jnp.concatenate([
        w1.astype(jnp.float32).reshape(-1),               # [ 0:16) W1 row-major (feature, hidden)
        b1.astype(jnp.float32).reshape(-1),               # [16:24) b1
        w3.astype(jnp.float32).reshape(-1),               # [24:32) W3
        b3.astype(jnp.float32).reshape(-1),               # [32:33) b3
    ])

    cost = pl.CostEstimate(
        flops=58 * b_pad,                                  # ~58 MAC/add/relu flops per row
        transcendentals=0,
        bytes_accessed=12 * b_pad + params.size * 4,       # 8 B/row in + 4 B/row out
    )

    y = pl.pallas_call(
        mlp_kernel,
        out_shape=jax.ShapeDtypeStruct((rows_pad, LANES), jnp.float32),
        grid=(n_tiles,),
        in_specs=[
            pl.BlockSpec(memory_space=pltpu.MemorySpace.SMEM),         # params (scalars)
            pl.BlockSpec((2, tile_rows, LANES), lambda i: (0, i, 0)),  # x planes, batch-tiled
        ],
        out_specs=pl.BlockSpec((tile_rows, LANES), lambda i: (i, 0)),  # dense output tile
        compiler_params=pltpu.CompilerParams(
            dimension_semantics=("parallel",),      # split batch tiles across v7x's two TCs
            vmem_limit_bytes=48 * 1024 * 1024,      # fits v7x 64 MiB physical w/ headroom
        ),
        cost_estimate=cost,
    )(params, xp)

    # Free reshape back to the module's (B, 1); slice only if we actually padded.
    y = y.reshape(b_pad, 1)
    if b_pad != B:
        y = y[:B]
    return y


def init_params(key):
    # Deterministic init mimicking nn.Linear's uniform(-1/sqrt(fan_in), 1/sqrt(fan_in)).
    k1, k2, k3, k4 = jax.random.split(key, 4)
    bound1 = 1.0 / jnp.sqrt(2.0)   # fc1: fan_in = 2
    bound3 = 1.0 / jnp.sqrt(8.0)   # fc3: fan_in = 8
    w1 = jax.random.uniform(k1, (2, 8), jnp.float32, -bound1, bound1)
    b1 = jax.random.uniform(k2, (1, 8), jnp.float32, -bound1, bound1)
    w3 = jax.random.uniform(k3, (8, 1), jnp.float32, -bound3, bound3)
    b3 = jax.random.uniform(k4, (1, 1), jnp.float32, -bound3, bound3)
    # fc2 (8->8) is defined in the PyTorch module but never used in forward -> omitted.
    return w1, b1, w3, b3


if __name__ == "__main__":
    key = jax.random.PRNGKey(0)
    kx, kp = jax.random.split(key)

    B = 8  # small demo batch (padded internally to one 8x128 tile)
    x = jax.random.normal(kx, (B, 2), dtype=jnp.float32)
    w1, b1, w3, b3 = init_params(kp)

    out = my_template_net(x, w1, b1, w3, b3)
    out = jax.block_until_ready(out)

    # Pure-JAX reference check.
    ref = jnp.maximum(jnp.maximum(x @ w1 + b1, 0.0) @ w3 + b3, 0.0)
    assert out.shape == (B, 1)
    assert jnp.allclose(out, ref, atol=1e-5, rtol=1e-5)

    print("KERNEL_OK")
</pallas_src>

<mosaic_0001>
module attributes {stable_mosaic.version = 11 : i64} {
  func.func @mlp_kernel(%arg0: i32, %arg1: memref<33xf32, #tpu.memory_space<smem>>, %arg2: memref<2x8x128xf32, #tpu.memory_space<vmem>>, %arg3: memref<8x128xf32, #tpu.memory_space<vmem>>) attributes {dimension_semantics = [#tpu.dimension_semantics<parallel>], iteration_bounds = array<i64: 1>, scalar_prefetch = 0 : i64, scratch_operands = 0 : i64, tpu.core_type = #tpu.core_type<tc>, window_params = [{transform_indices = @transform_0, window_bounds = array<i64: 33>}, {transform_indices = @transform_1, window_bounds = array<i64: 2, 8, 128>}, {transform_indices = @transform_2, window_bounds = array<i64: 8, 128>}]} {
    %c0 = arith.constant 0 : index
    %c0_0 = arith.constant 0 : index
    %c0_1 = arith.constant 0 : index
    %0 = vector.load %arg2[%c0, %c0_0, %c0_1] : memref<2x8x128xf32, #tpu.memory_space<vmem>>, vector<1x8x128xf32>
    %1 = vector.shape_cast %0 : vector<1x8x128xf32> to vector<8x128xf32>
    %c1 = arith.constant 1 : index
    %c0_2 = arith.constant 0 : index
    %c0_3 = arith.constant 0 : index
    %2 = vector.load %arg2[%c1, %c0_2, %c0_3] : memref<2x8x128xf32, #tpu.memory_space<vmem>>, vector<1x8x128xf32>
    %3 = vector.shape_cast %2 : vector<1x8x128xf32> to vector<8x128xf32>
    %c0_4 = arith.constant 0 : index
    %4 = memref.load %arg1[%c0_4] : memref<33xf32, #tpu.memory_space<smem>>
    %5 = vector.broadcast %4 : f32 to vector<8x128xf32>
    %6 = arith.mulf %1, %5 : vector<8x128xf32>
    %c8 = arith.constant 8 : index
    %7 = memref.load %arg1[%c8] : memref<33xf32, #tpu.memory_space<smem>>
    %8 = vector.broadcast %7 : f32 to vector<8x128xf32>
    %9 = arith.mulf %3, %8 : vector<8x128xf32>
    %10 = arith.addf %6, %9 : vector<8x128xf32>
    %c16 = arith.constant 16 : index
    %11 = memref.load %arg1[%c16] : memref<33xf32, #tpu.memory_space<smem>>
    %12 = vector.broadcast %11 : f32 to vector<8x128xf32>
    %13 = arith.addf %10, %12 : vector<8x128xf32>
    %cst = arith.constant 0.000000e+00 : f32
    %14 = vector.broadcast %cst : f32 to vector<8x128xf32>
    %15 = arith.maximumf %13, %14 : vector<8x128xf32>
    %c24 = arith.constant 24 : index
    %16 = memref.load %arg1[%c24] : memref<33xf32, #tpu.memory_space<smem>>
    %17 = vector.broadcast %16 : f32 to vector<8x128xf32>
    %18 = arith.mulf %15, %17 : vector<8x128xf32>
    %c1_5 = arith.constant 1 : index
    %19 = memref.load %arg1[%c1_5] : memref<33xf32, #tpu.memory_space<smem>>
    %20 = vector.broadcast %19 : f32 to vector<8x128xf32>
    %21 = arith.mulf %1, %20 : vector<8x128xf32>
    %c9 = arith.constant 9 : index
    %22 = memref.load %arg1[%c9] : memref<33xf32, #tpu.memory_space<smem>>
    %23 = vector.broadcast %22 : f32 to vector<8x128xf32>
    %24 = arith.mulf %3, %23 : vector<8x128xf32>
    %25 = arith.addf %21, %24 : vector<8x128xf32>
    %c17 = arith.constant 17 : index
    %26 = memref.load %arg1[%c17] : memref<33xf32, #tpu.memory_space<smem>>
    %27 = vector.broadcast %26 : f32 to vector<8x128xf32>
    %28 = arith.addf %25, %27 : vector<8x128xf32>
    %cst_6 = arith.constant 0.000000e+00 : f32
    %29 = vector.broadcast %cst_6 : f32 to vector<8x128xf32>
    %30 = arith.maximumf %28, %29 : vector<8x128xf32>
    %c25 = arith.constant 25 : index
    %31 = memref.load %arg1[%c25] : memref<33xf32, #tpu.memory_space<smem>>
    %32 = vector.broadcast %31 : f32 to vector<8x128xf32>
    %33 = arith.mulf %30, %32 : vector<8x128xf32>
    %34 = arith.addf %18, %33 : vector<8x128xf32>
    %c2 = arith.constant 2 : index
    %35 = memref.load %arg1[%c2] : memref<33xf32, #tpu.memory_space<smem>>
    %36 = vector.broadcast %35 : f32 to vector<8x128xf32>
    %37 = arith.mulf %1, %36 : vector<8x128xf32>
    %c10 = arith.constant 10 : index
    %38 = memref.load %arg1[%c10] : memref<33xf32, #tpu.memory_space<smem>>
    %39 = vector.broadcast %38 : f32 to vector<8x128xf32>
    %40 = arith.mulf %3, %39 : vector<8x128xf32>
    %41 = arith.addf %37, %40 : vector<8x128xf32>
    %c18 = arith.constant 18 : index
    %42 = memref.load %arg1[%c18] : memref<33xf32, #tpu.memory_space<smem>>
    %43 = vector.broadcast %42 : f32 to vector<8x128xf32>
    %44 = arith.addf %41, %43 : vector<8x128xf32>
    %cst_7 = arith.constant 0.000000e+00 : f32
    %45 = vector.broadcast %cst_7 : f32 to vector<8x128xf32>
    %46 = arith.maximumf %44, %45 : vector<8x128xf32>
    %c26 = arith.constant 26 : index
    %47 = memref.load %arg1[%c26] : memref<33xf32, #tpu.memory_space<smem>>
    %48 = vector.broadcast %47 : f32 to vector<8x128xf32>
    %49 = arith.mulf %46, %48 : vector<8x128xf32>
    %50 = arith.addf %34, %49 : vector<8x128xf32>
    %c3 = arith.constant 3 : index
    %51 = memref.load %arg1[%c3] : memref<33xf32, #tpu.memory_space<smem>>
    %52 = vector.broadcast %51 : f32 to vector<8x128xf32>
    %53 = arith.mulf %1, %52 : vector<8x128xf32>
    %c11 = arith.constant 11 : index
    %54 = memref.load %arg1[%c11] : memref<33xf32, #tpu.memory_space<smem>>
    %55 = vector.broadcast %54 : f32 to vector<8x128xf32>
    %56 = arith.mulf %3, %55 : vector<8x128xf32>
    %57 = arith.addf %53, %56 : vector<8x128xf32>
    %c19 = arith.constant 19 : index
    %58 = memref.load %arg1[%c19] : memref<33xf32, #tpu.memory_space<smem>>
    %59 = vector.broadcast %58 : f32 to vector<8x128xf32>
    %60 = arith.addf %57, %59 : vector<8x128xf32>
    %cst_8 = arith.constant 0.000000e+00 : f32
    %61 = vector.broadcast %cst_8 : f32 to vector<8x128xf32>
    %62 = arith.maximumf %60, %61 : vector<8x128xf32>
    %c27 = arith.constant 27 : index
    %63 = memref.load %arg1[%c27] : memref<33xf32, #tpu.memory_space<smem>>
    %64 = vector.broadcast %63 : f32 to vector<8x128xf32>
    %65 = arith.mulf %62, %64 : vector<8x128xf32>
    %66 = arith.addf %50, %65 : vector<8x128xf32>
    %c4 = arith.constant 4 : index
    %67 = memref.load %arg1[%c4] : memref<33xf32, #tpu.memory_space<smem>>
    %68 = vector.broadcast %67 : f32 to vector<8x128xf32>
    %69 = arith.mulf %1, %68 : vector<8x128xf32>
    %c12 = arith.constant 12 : index
    %70 = memref.load %arg1[%c12] : memref<33xf32, #tpu.memory_space<smem>>
    %71 = vector.broadcast %70 : f32 to vector<8x128xf32>
    %72 = arith.mulf %3, %71 : vector<8x128xf32>
    %73 = arith.addf %69, %72 : vector<8x128xf32>
    %c20 = arith.constant 20 : index
    %74 = memref.load %arg1[%c20] : memref<33xf32, #tpu.memory_space<smem>>
    %75 = vector.broadcast %74 : f32 to vector<8x128xf32>
    %76 = arith.addf %73, %75 : vector<8x128xf32>
    %cst_9 = arith.constant 0.000000e+00 : f32
    %77 = vector.broadcast %cst_9 : f32 to vector<8x128xf32>
    %78 = arith.maximumf %76, %77 : vector<8x128xf32>
    %c28 = arith.constant 28 : index
    %79 = memref.load %arg1[%c28] : memref<33xf32, #tpu.memory_space<smem>>
    %80 = vector.broadcast %79 : f32 to vector<8x128xf32>
    %81 = arith.mulf %78, %80 : vector<8x128xf32>
    %82 = arith.addf %66, %81 : vector<8x128xf32>
    %c5 = arith.constant 5 : index
    %83 = memref.load %arg1[%c5] : memref<33xf32, #tpu.memory_space<smem>>
    %84 = vector.broadcast %83 : f32 to vector<8x128xf32>
    %85 = arith.mulf %1, %84 : vector<8x128xf32>
    %c13 = arith.constant 13 : index
    %86 = memref.load %arg1[%c13] : memref<33xf32, #tpu.memory_space<smem>>
    %87 = vector.broadcast %86 : f32 to vector<8x128xf32>
    %88 = arith.mulf %3, %87 : vector<8x128xf32>
    %89 = arith.addf %85, %88 : vector<8x128xf32>
    %c21 = arith.constant 21 : index
    %90 = memref.load %arg1[%c21] : memref<33xf32, #tpu.memory_space<smem>>
    %91 = vector.broadcast %90 : f32 to vector<8x128xf32>
    %92 = arith.addf %89, %91 : vector<8x128xf32>
    %cst_10 = arith.constant 0.000000e+00 : f32
    %93 = vector.broadcast %cst_10 : f32 to vector<8x128xf32>
    %94 = arith.maximumf %92, %93 : vector<8x128xf32>
    %c29 = arith.constant 29 : index
    %95 = memref.load %arg1[%c29] : memref<33xf32, #tpu.memory_space<smem>>
    %96 = vector.broadcast %95 : f32 to vector<8x128xf32>
    %97 = arith.mulf %94, %96 : vector<8x128xf32>
    %98 = arith.addf %82, %97 : vector<8x128xf32>
    %c6 = arith.constant 6 : index
    %99 = memref.load %arg1[%c6] : memref<33xf32, #tpu.memory_space<smem>>
    %100 = vector.broadcast %99 : f32 to vector<8x128xf32>
    %101 = arith.mulf %1, %100 : vector<8x128xf32>
    %c14 = arith.constant 14 : index
    %102 = memref.load %arg1[%c14] : memref<33xf32, #tpu.memory_space<smem>>
    %103 = vector.broadcast %102 : f32 to vector<8x128xf32>
    %104 = arith.mulf %3, %103 : vector<8x128xf32>
    %105 = arith.addf %101, %104 : vector<8x128xf32>
    %c22 = arith.constant 22 : index
    %106 = memref.load %arg1[%c22] : memref<33xf32, #tpu.memory_space<smem>>
    %107 = vector.broadcast %106 : f32 to vector<8x128xf32>
    %108 = arith.addf %105, %107 : vector<8x128xf32>
    %cst_11 = arith.constant 0.000000e+00 : f32
    %109 = vector.broadcast %cst_11 : f32 to vector<8x128xf32>
    %110 = arith.maximumf %108, %109 : vector<8x128xf32>
    %c30 = arith.constant 30 : index
    %111 = memref.load %arg1[%c30] : memref<33xf32, #tpu.memory_space<smem>>
    %112 = vector.broadcast %111 : f32 to vector<8x128xf32>
    %113 = arith.mulf %110, %112 : vector<8x128xf32>
    %114 = arith.addf %98, %113 : vector<8x128xf32>
    %c7 = arith.constant 7 : index
    %115 = memref.load %arg1[%c7] : memref<33xf32, #tpu.memory_space<smem>>
    %116 = vector.broadcast %115 : f32 to vector<8x128xf32>
    %117 = arith.mulf %1, %116 : vector<8x128xf32>
    %c15 = arith.constant 15 : index
    %118 = memref.load %arg1[%c15] : memref<33xf32, #tpu.memory_space<smem>>
    %119 = vector.broadcast %118 : f32 to vector<8x128xf32>
    %120 = arith.mulf %3, %119 : vector<8x128xf32>
    %121 = arith.addf %117, %120 : vector<8x128xf32>
    %c23 = arith.constant 23 : index
    %122 = memref.load %arg1[%c23] : memref<33xf32, #tpu.memory_space<smem>>
    %123 = vector.broadcast %122 : f32 to vector<8x128xf32>
    %124 = arith.addf %121, %123 : vector<8x128xf32>
    %cst_12 = arith.constant 0.000000e+00 : f32
    %125 = vector.broadcast %cst_12 : f32 to vector<8x128xf32>
    %126 = arith.maximumf %124, %125 : vector<8x128xf32>
    %c31 = arith.constant 31 : index
    %127 = memref.load %arg1[%c31] : memref<33xf32, #tpu.memory_space<smem>>
    %128 = vector.broadcast %127 : f32 to vector<8x128xf32>
    %129 = arith.mulf %126, %128 : vector<8x128xf32>
    %130 = arith.addf %114, %129 : vector<8x128xf32>
    %c32 = arith.constant 32 : index
    %131 = memref.load %arg1[%c32] : memref<33xf32, #tpu.memory_space<smem>>
    %132 = vector.broadcast %131 : f32 to vector<8x128xf32>
    %133 = arith.addf %130, %132 : vector<8x128xf32>
    %cst_13 = arith.constant 0.000000e+00 : f32
    %134 = vector.broadcast %cst_13 : f32 to vector<8x128xf32>
    %135 = arith.maximumf %133, %134 : vector<8x128xf32>
    %c0_14 = arith.constant 0 : index
    %c0_15 = arith.constant 0 : index
    %136 = vector.load %arg3[%c0_14, %c0_15] : memref<8x128xf32, #tpu.memory_space<vmem>>, vector<8x128xf32>
    tpu.vector_store %arg3[%c0_14, %c0_15], %135 {strides = array<i32>} : memref<8x128xf32, #tpu.memory_space<vmem>>, vector<8x128xf32>,
    return
  }
  func.func @transform_0(%arg0: i32) -> i32 {
    %c0_i32 = arith.constant 0 : i32
    %c0_i32_0 = arith.constant 0 : i32
    return %c0_i32 : i32
  }
  func.func @transform_1(%arg0: i32) -> (i32, i32, i32) {
    %c0_i32 = arith.constant 0 : i32
    %c0_i32_0 = arith.constant 0 : i32
    %c0_i32_1 = arith.constant 0 : i32
    return %c0_i32, %arg0, %c0_i32_0 : i32, i32, i32
  }
  func.func @transform_2(%arg0: i32) -> (i32, i32) {
    %c0_i32 = arith.constant 0 : i32
    %c0_i32_0 = arith.constant 0 : i32
    return %arg0, %c0_i32 : i32, i32
  }
}

</mosaic_0001>

<bundles_post_ra>
// kernel: my_template_net.1
= control target key start
LH: loop header
LB: loop body
LE: loop exit
PB: predicated region body
PF: predicated region fallthrough
CT: control target
= control target key end

     0   :  { %7 = vsyncpa [#allocation3], 0  ;;  %s204_s12 = smov [#allocation2]   ;;  %s288_s0 = inlined_call_operand.vmem [shape: f32[33], index: 0, kind: input, shape index: {}]   ;;  %s289_s1 = inlined_call_operand.vmem [shape: f32[2,8,128], index: 1, kind: input, shape index: {}]   ;;  %s290_s2 = inlined_call_operand.vmem [shape: f32[8,128], index: 2, kind: output, shape index: {}]  }
   0x1   :  { %s13_s11 = sshll.u32 %s288_s0, 4  ;;  %s14_s11 = int_to_ptr.vmem [resolvable:$true] %s13_s11 }
   0x2   :  { %16 = dma.vmem_to_smem %s14_s11, 16, %s204_s12, [#allocation3]  }
   0x3   :  { %202 = dma.done.wait [#allocation3], 16  }
   0x4   :  { %203 = vsyncadd [#allocation3], 4294967280 }
   0x5   :  { %23 = sfence }
   0x6   :  { %s27_s13 = sld [smem:[#allocation2]]  ;;  %v228_v0 = vld [vmem:[%s289_s1] sm:$0xff]  ;;  %v233_v1 = vld [vmem:[%s289_s1 + $0x8] sm:$0xff] }
   0x7   :  { %s157_s14 = sld [smem:[#allocation2 + $0x8]] }
   0x8   :  { %s158_s15 = sld [smem:[#allocation2 + $0x10]] }
   0x9   :  { %s223_s16 = sld [smem:[#allocation2 + $0x18]] }
   0xa   :  { %s160_s19 = sld [smem:[#allocation2 + $0x1]] }
   0xb   :  { %s161_s0 = sld [smem:[#allocation2 + $0x9]] }
   0xc   :  { %v28_v2 = vstv %s27_s13  ;;  %s162_s22 = sld [smem:[#allocation2 + $0x11]] }
   0xd   :  { %v29_v3 = vmul.f32 %v28_v2, %v228_v0  ;;  %v31_v4 = vstv %s157_s14  ;;  %s236_s23 = sld [smem:[#allocation2 + $0x19]] }
   0xe   :  { %v32_v5 = vmul.f32 %v233_v1, %v31_v4  ;;  %s164_s24 = sld [smem:[#allocation2 + $0x2]]  ;;  %v35_v6 = vstv %s158_s15 }
   0xf   :  { %s165_s25 = sld [smem:[#allocation2 + $0xa]]  ;;  %v39_v17 = vstv %s223_s16 }
  0x10   :  { %v33_v7 = vadd.f32 %v32_v5, %v29_v3  ;;  %v42_v8 = vstv %s160_s19  ;;  %s239_s26 = sld [smem:[#allocation2 + $0x12]] }
  0x11   :  { %v43_v9 = vmul.f32 %v42_v8, %v228_v0  ;;  %v45_v10 = vstv %s161_s0  ;;  %s242_s1 = sld [smem:[#allocation2 + $0x1a]] }
  0x12   :  { %v36_v11 = vadd.f32 %v35_v6, %v33_v7  ;;  %v46_v12 = vmul.f32 %v233_v1, %v45_v10  ;;  %s168_s27 = sld [smem:[#allocation2 + $0x3]]  ;;  %v49_v13 = vstv %s162_s22 }
  0x13   :  { %s169_s28 = sld [smem:[#allocation2 + $0xb]]  ;;  %v53_v22 = vstv %s236_s23 }
  0x14   :  { %v37_v14 = vmax.f32 %v36_v11, 0.0  ;;  %v47_v15 = vadd.f32 %v46_v12, %v43_v9  ;;  %v57_v16 = vstv %s164_s24  ;;  %s245_s29 = sld [smem:[#allocation2 + $0x13]] }
  0x15   :  { %v58_v18 = vmul.f32 %v57_v16, %v228_v0  ;;  %v60_v19 = vstv %s165_s25  ;;  %s249_s30 = sld [smem:[#allocation2 + $0x1b]] }
  0x16   :  { %v50_v20 = vadd.f32 %v49_v13, %v47_v15  ;;  %v61_v21 = vmul.f32 %v233_v1, %v60_v19  ;;  %s172_s3 = sld [smem:[#allocation2 + $0x4]]  ;;  %v64_v23 = vstv %s239_s26  ;;  %v40_v24 = vmul.f32 %v39_v17, %v37_v14 }
  0x17   :  { %s173_s4 = sld [smem:[#allocation2 + $0xc]]  ;;  %v68_v33 = vstv %s242_s1 }
  0x18   :  { %v51_v25 = vmax.f32 %v50_v20, 0.0  ;;  %v62_v26 = vadd.f32 %v61_v21, %v58_v18  ;;  %v72_v27 = vstv %s168_s27  ;;  %s254_s5 = sld [smem:[#allocation2 + $0x14]] }
  0x19   :  { %v73_v28 = vmul.f32 %v72_v27, %v228_v0  ;;  %v75_v29 = vstv %s169_s28  ;;  %s257_s6 = sld [smem:[#allocation2 + $0x1c]] }
  0x1a   :  { %v54_v30 = vmul.f32 %v53_v22, %v51_v25  ;;  %v65_v31 = vadd.f32 %v64_v23, %v62_v26  ;;  %v76_v32 = vmul.f32 %v233_v1, %v75_v29  ;;  %s176_s7 = sld [smem:[#allocation2 + $0x5]]  ;;  %v79_v34 = vstv %s245_s29 }
  0x1b   :  { %s177_s8 = sld [smem:[#allocation2 + $0xd]]  ;;  %v83_v44 = vstv %s249_s30 }
  0x1c   :  { %v55_v35 = vadd.f32 %v54_v30, %v40_v24  ;;  %v66_v36 = vmax.f32 %v65_v31, 0.0  ;;  %v77_v37 = vadd.f32 %v76_v32, %v73_v28  ;;  %v87_v38 = vstv %s172_s3  ;;  %s262_s9 = sld [smem:[#allocation2 + $0x15]] }
  0x1d   :  { %v88_v39 = vmul.f32 %v87_v38, %v228_v0  ;;  %v90_v40 = vstv %s173_s4  ;;  %s265_s10 = sld [smem:[#allocation2 + $0x1d]] }
  0x1e   :  { %v69_v41 = vmul.f32 %v68_v33, %v66_v36  ;;  %v80_v42 = vadd.f32 %v79_v34, %v77_v37  ;;  %v91_v43 = vmul.f32 %v233_v1, %v90_v40  ;;  %s180_s11 = sld [smem:[#allocation2 + $0x6]]  ;;  %v94_v45 = vstv %s254_s5 }
  0x1f   :  { %s181_s12 = sld [smem:[#allocation2 + $0xe]]  ;;  %v98_v55 = vstv %s257_s6 }
  0x20   :  { %v70_v46 = vadd.f32 %v69_v41, %v55_v35  ;;  %v81_v47 = vmax.f32 %v80_v42, 0.0  ;;  %v92_v48 = vadd.f32 %v91_v43, %v88_v39  ;;  %v102_v49 = vstv %s176_s7  ;;  %s270_s13 = sld [smem:[#allocation2 + $0x16]] }
  0x21   :  { %v103_v50 = vmul.f32 %v102_v49, %v228_v0  ;;  %v105_v51 = vstv %s177_s8  ;;  %s273_s14 = sld [smem:[#allocation2 + $0x1e]] }
  0x22   :  { %v84_v52 = vmul.f32 %v83_v44, %v81_v47  ;;  %v95_v53 = vadd.f32 %v94_v45, %v92_v48  ;;  %v106_v54 = vmul.f32 %v233_v1, %v105_v51  ;;  %s184_s15 = sld [smem:[#allocation2 + $0x7]]  ;;  %v109_v56 = vstv %s262_s9 }
  0x23   :  { %s185_s16 = sld [smem:[#allocation2 + $0xf]]  ;;  %v113_v4 = vstv %s265_s10 }
  0x24   :  { %v85_v57 = vadd.f32 %v84_v52, %v70_v46  ;;  %v96_v58 = vmax.f32 %v95_v53, 0.0  ;;  %v107_v59 = vadd.f32 %v106_v54, %v103_v50  ;;  %v117_v60 = vstv %s180_s11  ;;  %s186_s17 = sld [smem:[#allocation2 + $0x17]] }
  0x25   :  { %v118_v61 = vmul.f32 %v117_v60, %v228_v0  ;;  %v120_v62 = vstv %s181_s12  ;;  %s187_s18 = sld [smem:[#allocation2 + $0x1f]] }
  0x26   :  { %v99_v63 = vmul.f32 %v98_v55, %v96_v58  ;;  %v110_v2 = vadd.f32 %v109_v56, %v107_v59  ;;  %v121_v3 = vmul.f32 %v233_v1, %v120_v62  ;;  %v124_v5 = vstv %s270_s13  ;;  %s188_s19 = sld [smem:[#allocation2 + $0x20]] }
  0x27   :  { %v128_v15 = vstv %s273_s14 }
  0x28   :  { %v100_v6 = vadd.f32 %v99_v63, %v85_v57  ;;  %v111_v7 = vmax.f32 %v110_v2, 0.0  ;;  %v122_v8 = vadd.f32 %v121_v3, %v118_v61  ;;  %v132_v9 = vstv %s184_s15 }
  0x29   :  { %v133_v10 = vmul.f32 %v132_v9, %v228_v0  ;;  %v135_v11 = vstv %s185_s16 }
  0x2a   :  { %v114_v12 = vmul.f32 %v113_v4, %v111_v7  ;;  %v125_v13 = vadd.f32 %v124_v5, %v122_v8  ;;  %v136_v14 = vmul.f32 %v233_v1, %v135_v11  ;;  %v139_v16 = vstv %s186_s17 }
  0x2b   :  { %v143_v22 = vstv %s187_s18 }
  0x2c   :  { %v115_v17 = vadd.f32 %v114_v12, %v100_v6  ;;  %v126_v18 = vmax.f32 %v125_v13, 0.0  ;;  %v137_v19 = vadd.f32 %v136_v14, %v133_v10  ;;  %v147_v26 = vstv %s188_s19 }
  0x2e   :  { %v129_v20 = vmul.f32 %v128_v15, %v126_v18  ;;  %v140_v21 = vadd.f32 %v139_v16, %v137_v19 }
  0x30   :  { %v130_v23 = vadd.f32 %v129_v20, %v115_v17  ;;  %v141_v24 = vmax.f32 %v140_v21, 0.0 }
  0x32   :  { %v144_v25 = vmul.f32 %v143_v22, %v141_v24 }
  0x34   :  { %v145_v27 = vadd.f32 %v144_v25, %v130_v23 }
  0x36   :  { %v148_v0 = vadd.f32 %v147_v26, %v145_v27 }
  0x38   :  { %v149_v28 = vmax.f32 %v148_v0, 0.0 }
  0x3a   :  { %150 = vst [vmem:[%s290_s2] sm:$0xff] %v149_v28 }
  0x3b   :  { %155 = vsyncpa [#allocation3], 1 }

</bundles_post_ra>
